<compile_context>
chip_gen: v6e
topology: v6e:2x2x1
jax: 0.10.0
libtpu: 0.0.40
codegen_flags: <defaults>
</compile_context>

<pallas_src>
import jax
import jax.numpy as jnp
from jax.experimental import pallas as pl
from jax.experimental.pallas import tpu as pltpu


def _round_up(x, m):
    return ((x + m - 1) // m) * m


# ----------------------------------------------------------------------------- kernel
def decoder_attn_kernel(
    # inputs
    xin_ref,      # (B, E+2H) f32   [embedded token | h0_fwd | h0_bwd]
    c0_ref,       # (B, 2H)   f32   [c0_fwd | c0_bwd]
    enc_ref,      # (B, L, 2H) bf16 encoder hidden states (batch-first)
    cov_ref,      # (B, L)    f32   coverage
    w_lstm_ref,   # (E+2H, 8H) bf16 fused gate-interleaved LSTM weight
    b_lstm_ref,   # (1, 8H)   f32   fused gate-interleaved LSTM bias
    w_enc_ref,    # (2H, 2H)  bf16  attention enc_proj (no bias)
    w_hid_ref,    # (2H, 3H)  bf16  [dec_proj | top half of output head v]
    b_dec_ref,    # (1, 2H)   f32   dec_proj bias
    w_c_ref,      # (1, 2H)   f32   coverage projection
    v_attn_ref,   # (1, 2H)   f32   attention score vector
    w_vb_ref,     # (2H, H)   bf16  bottom half of output head v (ctx part)
    b_v_ref,      # (1, H)    f32
    w_out_ref,    # (H, V)    bf16  vocab projection
    b_out_ref,    # (1, V)    f32
    # output
    slab_ref,     # (B, SLAB) f32   [vocab | attn | ctx | hidden | cell | pad]
):
    f32, bf16 = jnp.float32, jnp.bfloat16

    B = xin_ref.shape[0]
    H2 = c0_ref.shape[1]          # 2H
    H = H2 // 2
    L = enc_ref.shape[1]
    V = w_out_ref.shape[1]

    # ---- fused single-step bidirectional LSTM: ONE MXU dot for all gates ----
    # gate layout: [i_f|i_b | f_f|f_b | g_f|g_b | o_f|o_b], each block H wide.
    # (At realistic H the 2H-wide gate slices land on 128-lane boundaries.)
    gates = jnp.dot(xin_ref[...].astype(bf16), w_lstm_ref[...],
                    preferred_element_type=f32) + b_lstm_ref[...]        # (B, 8H)
    i = jax.nn.sigmoid(gates[:, 0 * H2:1 * H2])
    f = jax.nn.sigmoid(gates[:, 1 * H2:2 * H2])
    g = jnp.tanh(gates[:, 2 * H2:3 * H2])
    o = jax.nn.sigmoid(gates[:, 3 * H2:4 * H2])
    c = f * c0_ref[...] + i * g                                          # (B,2H)=[c_f|c_b]
    hidden = o * jnp.tanh(c)                                             # (B,2H)=[h_f|h_b]
    hidden_bf = hidden.astype(bf16)

    # ---- hidden-side projections fused: [dec_proj | v_top] in one dot ----
    hproj = jnp.dot(hidden_bf, w_hid_ref[...], preferred_element_type=f32)  # (B, 3H)
    dec_feat = hproj[:, :H2] + b_dec_ref[...]                               # (B, 2H)
    out1_hid = hproj[:, H2:H2 + H]                                          # (B, H)

    # ---- attention ----
    enc = enc_ref[...]                                                   # (B, L, 2H) bf16
    enc_feat = jnp.dot(enc.reshape(B * L, H2), w_enc_ref[...],
                       preferred_element_type=f32).reshape(B, L, H2)
    cov_feat = cov_ref[...][:, :, None] * w_c_ref[...][:, None, :]       # (B, L, 2H) f32
    scores = jnp.tanh(enc_feat + dec_feat[:, None, :] + cov_feat)
    # score reduction over 2H (at realistic 2H this is a (B*L,2H)@(2H,1) MXU dot)
    e = jnp.sum(scores * v_attn_ref[...][:, None, :], axis=-1)           # (B, L)

    e_max = jnp.max(e, axis=-1, keepdims=True)
    e_exp = jnp.exp(e - e_max)
    attn = e_exp * pl.reciprocal(jnp.sum(e_exp, axis=-1, keepdims=True),
                                 approx=True)                            # (B, L)

    # ---- context vector on the MXU: (B,1,L) @ (B,L,2H) -> (B,1,2H) ----
    attn3 = attn.astype(bf16)[:, None, :]
    ctx3 = jnp.einsum('bql,blh->bqh', attn3, enc, preferred_element_type=f32)
    ctx = jnp.sum(ctx3, axis=1)                                          # (B, 2H) squeeze

    # ---- output head + vocab softmax ----
    out1 = out1_hid + jnp.dot(ctx.astype(bf16), w_vb_ref[...],
                              preferred_element_type=f32) + b_v_ref[...]   # (B, H)
    logits = jnp.dot(out1.astype(bf16), w_out_ref[...],
                     preferred_element_type=f32) + b_out_ref[...]          # (B, V)
    l_max = jnp.max(logits, axis=-1, keepdims=True)
    l_exp = jnp.exp(logits - l_max)
    vocab = l_exp * pl.reciprocal(jnp.sum(l_exp, axis=-1, keepdims=True),
                                  approx=True)

    # ---- single lane-dense output slab (one DMA, unmasked 128-multiple store) ----
    pad = slab_ref.shape[1] - (V + L + 3 * H2)
    pieces = [vocab, attn, ctx, hidden, c]
    if pad > 0:
        pieces.append(jnp.zeros((B, pad), f32))
    slab_ref[...] = jnp.concatenate(pieces, axis=-1)


# ----------------------------------------------------------------------------- param fusion (one-time)
def _interleave_gates(w_f, w_b, H):
    """[i|f|g|o] blocks (width H) per direction -> [i_f|i_b|f_f|f_b|g_f|g_b|o_f|o_b]."""
    cols = []
    for k in range(4):
        cols.append(w_f[:, k * H:(k + 1) * H])
        cols.append(w_b[:, k * H:(k + 1) * H])
    return jnp.concatenate(cols, axis=1)


def fuse_params(p):
    """Pre-fuse / pre-cast weights once (would be done at load time in practice)."""
    E, H4 = p["w_ih_f"].shape
    H = H4 // 4
    H2 = 2 * H
    bf16 = jnp.bfloat16

    w_x = _interleave_gates(p["w_ih_f"], p["w_ih_b"], H)                    # (E, 8H)
    w_hf = _interleave_gates(p["w_hh_f"], jnp.zeros_like(p["w_hh_b"]), H)   # (H, 8H) fwd rows
    w_hb = _interleave_gates(jnp.zeros_like(p["w_hh_f"]), p["w_hh_b"], H)   # (H, 8H) bwd rows
    return {
        "embedding": p["embedding"],
        "w_lstm": jnp.concatenate([w_x, w_hf, w_hb], axis=0).astype(bf16),  # (E+2H, 8H)
        "b_lstm": _interleave_gates(p["b_f"], p["b_b"], H),                 # (1, 8H) f32
        "w_enc": p["w_enc"].astype(bf16),
        "w_hid": jnp.concatenate([p["w_dec"], p["w_v"][:H2]], 1).astype(bf16),  # (2H, 3H)
        "b_dec": p["b_dec"],
        "w_c": p["w_c"],
        "v_attn": p["v_attn"],
        "w_v_bot": p["w_v"][H2:].astype(bf16),                              # (2H, H)
        "b_v": p["b_v"],
        "w_out": p["w_out"].astype(bf16),
        "b_out": p["b_out"],
    }


# ----------------------------------------------------------------------------- wrapper
def decoder_attention_forward(dec_input, prev_hidden, prev_cell, enc_hidden,
                              enc_pad_mask, coverage, fused):
    """Mirrors DecoderAttention.forward. enc_pad_mask is unused (as in PyTorch)."""
    del enc_pad_mask
    emb = fused["embedding"][dec_input]                       # (B, E)  glue gather
    B, _ = emb.shape
    H = prev_hidden.shape[-1]
    H2 = 2 * H
    L = enc_hidden.shape[0]
    V = fused["w_out"].shape[1]

    # tiny glue concats (B x (E+4H) elements)
    h_cat = jnp.concatenate([prev_hidden[0], prev_hidden[1]], axis=-1)   # (B, 2H)
    c_cat = jnp.concatenate([prev_cell[0], prev_cell[1]], axis=-1)       # (B, 2H)
    xin = jnp.concatenate([emb, h_cat], axis=-1)                         # (B, E+2H)

    # TODO(synk): at realistic L, fuse this permute into the encoder producer (or
    # stream enc seq-first through an L-tiled grid with an online softmax); here it
    # is one small glue op, and the bf16 cast halves its HBM traffic.
    enc_bl = jnp.transpose(enc_hidden, (1, 0, 2)).astype(jnp.bfloat16)   # (B, L, 2H)

    slab_w = _round_up(V + L + 3 * H2, 128)

    vmem = pl.BlockSpec(memory_space=pltpu.MemorySpace.VMEM)
    ins = (xin, c_cat, enc_bl, coverage,
           fused["w_lstm"], fused["b_lstm"], fused["w_enc"],
           fused["w_hid"], fused["b_dec"], fused["w_c"], fused["v_attn"],
           fused["w_v_bot"], fused["b_v"], fused["w_out"], fused["b_out"])

    slab = pl.pallas_call(
        decoder_attn_kernel,
        out_shape=jax.ShapeDtypeStruct((B, slab_w), jnp.float32),
        in_specs=[vmem] * len(ins),
        out_specs=vmem,
    )(*ins)

    # split the lane-dense slab back into the module's five outputs (tiny glue)
    vocab_dist = slab[:, :V]
    attn_dist = slab[:, V:V + L]
    ctx = slab[:, V + L:V + L + H2]
    hidden = slab[:, V + L + H2:V + L + 2 * H2]
    cell = slab[:, V + L + 2 * H2:V + L + 3 * H2]

    h_n = jnp.stack([hidden[:, :H], hidden[:, H:]], axis=0)   # (2, B, H)
    c_n = jnp.stack([cell[:, :H], cell[:, H:]], axis=0)       # (2, B, H)
    hidden_out = hidden.reshape(B, 1, H2)                     # PyTorch LSTM output shape
    # PyTorch code does `hidden, cell = self.lstm(...)` so `cell` is the (h_n, c_n) tuple.
    return vocab_dist, attn_dist, ctx, hidden_out, (h_n, c_n)


# ----------------------------------------------------------------------------- pure-JAX reference
def reference_forward(dec_input, prev_hidden, prev_cell, enc_hidden,
                      enc_pad_mask, coverage, p):
    """Mirrors the PyTorch module; matmul operands rounded to bf16 (f32 accumulate)
    exactly like the kernel's MXU path, all elementwise math in f32."""
    del enc_pad_mask
    bf16, f32 = jnp.bfloat16, jnp.float32

    def bdot(a, b):
        return jnp.dot(a.astype(bf16), b.astype(bf16), preferred_element_type=f32)

    emb = p["embedding"][dec_input]
    H = prev_hidden.shape[-1]

    def lstm_dir(x, h0, c0, wih, whh, b):
        gates = bdot(x, wih) + bdot(h0, whh) + b
        i = jax.nn.sigmoid(gates[:, :H])
        f = jax.nn.sigmoid(gates[:, H:2 * H])
        g = jnp.tanh(gates[:, 2 * H:3 * H])
        o = jax.nn.sigmoid(gates[:, 3 * H:])
        c = f * c0 + i * g
        return o * jnp.tanh(c), c

    h_f, c_f = lstm_dir(emb, prev_hidden[0], prev_cell[0], p["w_ih_f"], p["w_hh_f"], p["b_f"])
    h_b, c_b = lstm_dir(emb, prev_hidden[1], prev_cell[1], p["w_ih_b"], p["w_hh_b"], p["b_b"])
    hidden = jnp.concatenate([h_f, h_b], axis=-1)             # (B, 2H)

    enc = jnp.transpose(enc_hidden, (1, 0, 2))                # (B, L, 2H)
    B, L, H2 = enc.shape
    enc_feat = bdot(enc.reshape(B * L, H2), p["w_enc"]).reshape(B, L, H2)
    dec_feat = bdot(hidden, p["w_dec"]) + p["b_dec"]
    cov_feat = coverage[:, :, None] * p["w_c"][:, None, :]
    scores = jnp.tanh(enc_feat + dec_feat[:, None, :] + cov_feat)
    e = jnp.sum(scores * p["v_attn"][:, None, :], axis=-1)
    attn = jax.nn.softmax(e, axis=-1)
    ctx = jnp.einsum("bl,blh->bh", attn.astype(bf16), enc.astype(bf16),
                     preferred_element_type=f32)
    out1 = bdot(jnp.concatenate([hidden, ctx], axis=-1), p["w_v"]) + p["b_v"]
    logits = bdot(out1, p["w_out"]) + p["b_out"]
    vocab = jax.nn.softmax(logits, axis=-1)
    h_n = jnp.stack([h_f, h_b])
    c_n = jnp.stack([c_f, c_b])
    return vocab, attn, ctx, hidden.reshape(B, 1, H2), (h_n, c_n)


# ----------------------------------------------------------------------------- main
if __name__ == "__main__":
    # Config (small, consistent with the module): HIDDEN_DIM=16, WORD_EMBED_SIZE=32,
    # VOCAB_SIZE=32, USE_COVERAGE=True; batch B=2, encoder length L=8.
    B, L, H, E, V = 2, 8, 16, 32, 32
    H2, H4 = 2 * H, 4 * H

    key = jax.random.PRNGKey(0)
    ks = jax.random.split(key, 24)

    def rnd(k, shape, scale=0.1):
        return (scale * jax.random.normal(k, shape)).astype(jnp.float32)

    params = {
        "embedding": rnd(ks[0], (V, E), 1.0),
        # bidirectional LSTM (weights stored pre-transposed: (in, 4H), gates [i|f|g|o])
        "w_ih_f": rnd(ks[1], (E, H4)), "w_hh_f": rnd(ks[2], (H, H4)), "b_f": rnd(ks[3], (1, H4)),
        "w_ih_b": rnd(ks[4], (E, H4)), "w_hh_b": rnd(ks[5], (H, H4)), "b_b": rnd(ks[6], (1, H4)),
        # attention
        "w_enc": rnd(ks[7], (H2, H2)),
        "w_dec": rnd(ks[8], (H2, H2)), "b_dec": rnd(ks[9], (1, H2)),
        "w_c": rnd(ks[10], (1, H2)),
        "v_attn": rnd(ks[11], (1, H2)),
        # output heads
        "w_v": rnd(ks[12], (4 * H, H)), "b_v": rnd(ks[13], (1, H)),
        "w_out": rnd(ks[14], (H, V)), "b_out": rnd(ks[15], (1, V)),
    }

    dec_input = jax.random.randint(ks[16], (B,), 0, V)                  # token ids
    prev_hidden = rnd(ks[17], (2, B, H), 0.5)
    prev_cell = rnd(ks[18], (2, B, H), 0.5)
    enc_hidden = rnd(ks[19], (L, B, H2), 0.5)                           # seq-first, like PyTorch
    coverage = jnp.abs(rnd(ks[20], (B, L), 0.5))
    enc_pad_mask = jnp.ones((B, L), jnp.float32)                        # unused in forward

    fused = fuse_params(params)

    outs = decoder_attention_forward(dec_input, prev_hidden, prev_cell,
                                     enc_hidden, enc_pad_mask, coverage, fused)
    outs = jax.block_until_ready(outs)

    ref = reference_forward(dec_input, prev_hidden, prev_cell,
                            enc_hidden, enc_pad_mask, coverage, params)

    flat_o = jax.tree_util.tree_leaves(outs)
    flat_r = jax.tree_util.tree_leaves(ref)
    for o, r in zip(flat_o, flat_r):
        assert o.shape == r.shape, (o.shape, r.shape)
        # 2e-3 tolerance accounts for bf16 MXU operands (f32 accumulation) on both paths.
        assert jnp.allclose(o, r, atol=2e-3, rtol=2e-3), float(jnp.max(jnp.abs(o - r)))

    print("KERNEL_OK")
</pallas_src>

<mosaic_0001>
module attributes {stable_mosaic.version = 11 : i64} {
  func.func @decoder_attn_kernel(%arg0: memref<2x64xf32, #tpu.memory_space<vmem>>, %arg1: memref<2x32xf32, #tpu.memory_space<vmem>>, %arg2: memref<2x8x32xbf16, #tpu.memory_space<vmem>>, %arg3: memref<2x8xf32, #tpu.memory_space<vmem>>, %arg4: memref<64x128xbf16, #tpu.memory_space<vmem>>, %arg5: memref<1x128xf32, #tpu.memory_space<vmem>>, %arg6: memref<32x32xbf16, #tpu.memory_space<vmem>>, %arg7: memref<32x48xbf16, #tpu.memory_space<vmem>>, %arg8: memref<1x32xf32, #tpu.memory_space<vmem>>, %arg9: memref<1x32xf32, #tpu.memory_space<vmem>>, %arg10: memref<1x32xf32, #tpu.memory_space<vmem>>, %arg11: memref<32x16xbf16, #tpu.memory_space<vmem>>, %arg12: memref<1x16xf32, #tpu.memory_space<vmem>>, %arg13: memref<16x32xbf16, #tpu.memory_space<vmem>>, %arg14: memref<1x32xf32, #tpu.memory_space<vmem>>, %arg15: memref<2x256xf32, #tpu.memory_space<vmem>>) attributes {dimension_semantics = [], scalar_prefetch = 0 : i64, scratch_operands = 0 : i64, tpu.core_type = #tpu.core_type<tc>} {
    %c0 = arith.constant 0 : index
    %c0_0 = arith.constant 0 : index
    %0 = vector.load %arg0[%c0, %c0_0] : memref<2x64xf32, #tpu.memory_space<vmem>>, vector<2x64xf32>
    %1 = arith.truncf %0 : vector<2x64xf32> to vector<2x64xbf16>
    %c0_1 = arith.constant 0 : index
    %c0_2 = arith.constant 0 : index
    %2 = vector.load %arg4[%c0_1, %c0_2] : memref<64x128xbf16, #tpu.memory_space<vmem>>, vector<64x128xbf16>
    %cst = arith.constant dense<0.000000e+00> : vector<2x128xf32>
    %3 = tpu.matmul %1, %2, %cst {dimension_numbers = #tpu.dot_dimension_numbers<[1], [0], [0], [1], [0, 0, 1, 1], [], []>} : vector<2x64xbf16>, vector<64x128xbf16>, vector<2x128xf32> -> vector<2x128xf32>
    %c0_3 = arith.constant 0 : index
    %c0_4 = arith.constant 0 : index
    %4 = vector.load %arg5[%c0_3, %c0_4] : memref<1x128xf32, #tpu.memory_space<vmem>>, vector<1x128xf32>
    %5 = vector.broadcast %4 : vector<1x128xf32> to vector<2x128xf32>
    %6 = arith.addf %3, %5 : vector<2x128xf32>
    %7 = vector.extract_strided_slice %6 {offsets = [0, 0], sizes = [2, 32], strides = [1, 1]} : vector<2x128xf32> to vector<2x32xf32>
    %8 = arith.negf %7 : vector<2x32xf32>
    %9 = math.exp %8 : vector<2x32xf32>
    %cst_5 = arith.constant 1.000000e+00 : f32
    %10 = vector.broadcast %cst_5 : f32 to vector<2x32xf32>
    %11 = arith.addf %10, %9 : vector<2x32xf32>
    %12 = arith.divf %10, %11 : vector<2x32xf32>
    %13 = vector.extract_strided_slice %6 {offsets = [0, 32], sizes = [2, 32], strides = [1, 1]} : vector<2x128xf32> to vector<2x32xf32>
    %14 = arith.negf %13 : vector<2x32xf32>
    %15 = math.exp %14 : vector<2x32xf32>
    %cst_6 = arith.constant 1.000000e+00 : f32
    %16 = vector.broadcast %cst_6 : f32 to vector<2x32xf32>
    %17 = arith.addf %16, %15 : vector<2x32xf32>
    %18 = arith.divf %16, %17 : vector<2x32xf32>
    %19 = vector.extract_strided_slice %6 {offsets = [0, 64], sizes = [2, 32], strides = [1, 1]} : vector<2x128xf32> to vector<2x32xf32>
    %20 = math.tanh %19 : vector<2x32xf32>
    %21 = vector.extract_strided_slice %6 {offsets = [0, 96], sizes = [2, 32], strides = [1, 1]} : vector<2x128xf32> to vector<2x32xf32>
    %22 = arith.negf %21 : vector<2x32xf32>
    %23 = math.exp %22 : vector<2x32xf32>
    %cst_7 = arith.constant 1.000000e+00 : f32
    %24 = vector.broadcast %cst_7 : f32 to vector<2x32xf32>
    %25 = arith.addf %24, %23 : vector<2x32xf32>
    %26 = arith.divf %24, %25 : vector<2x32xf32>
    %c0_8 = arith.constant 0 : index
    %c0_9 = arith.constant 0 : index
    %27 = vector.load %arg1[%c0_8, %c0_9] : memref<2x32xf32, #tpu.memory_space<vmem>>, vector<2x32xf32>
    %28 = arith.mulf %18, %27 : vector<2x32xf32>
    %29 = arith.mulf %12, %20 : vector<2x32xf32>
    %30 = arith.addf %28, %29 : vector<2x32xf32>
    %31 = math.tanh %30 : vector<2x32xf32>
    %32 = arith.mulf %26, %31 : vector<2x32xf32>
    %33 = arith.truncf %32 : vector<2x32xf32> to vector<2x32xbf16>
    %c0_10 = arith.constant 0 : index
    %c0_11 = arith.constant 0 : index
    %34 = vector.load %arg7[%c0_10, %c0_11] : memref<32x48xbf16, #tpu.memory_space<vmem>>, vector<32x48xbf16>
    %cst_12 = arith.constant dense<0.000000e+00> : vector<2x48xf32>
    %35 = tpu.matmul %33, %34, %cst_12 {dimension_numbers = #tpu.dot_dimension_numbers<[1], [0], [0], [1], [0, 0, 1, 1], [], []>} : vector<2x32xbf16>, vector<32x48xbf16>, vector<2x48xf32> -> vector<2x48xf32>
    %36 = vector.extract_strided_slice %35 {offsets = [0, 0], sizes = [2, 32], strides = [1, 1]} : vector<2x48xf32> to vector<2x32xf32>
    %c0_13 = arith.constant 0 : index
    %c0_14 = arith.constant 0 : index
    %37 = vector.load %arg8[%c0_13, %c0_14] : memref<1x32xf32, #tpu.memory_space<vmem>>, vector<1x32xf32>
    %38 = vector.broadcast %37 : vector<1x32xf32> to vector<2x32xf32>
    %39 = arith.addf %36, %38 : vector<2x32xf32>
    %40 = vector.extract_strided_slice %35 {offsets = [0, 32], sizes = [2, 16], strides = [1, 1]} : vector<2x48xf32> to vector<2x16xf32>
    %c0_15 = arith.constant 0 : index
    %c0_16 = arith.constant 0 : index
    %c0_17 = arith.constant 0 : index
    %41 = vector.load %arg2[%c0_15, %c0_16, %c0_17] : memref<2x8x32xbf16, #tpu.memory_space<vmem>>, vector<2x8x32xbf16>
    %42 = vector.shape_cast %41 : vector<2x8x32xbf16> to vector<16x32xbf16>
    %c0_18 = arith.constant 0 : index
    %c0_19 = arith.constant 0 : index
    %43 = vector.load %arg6[%c0_18, %c0_19] : memref<32x32xbf16, #tpu.memory_space<vmem>>, vector<32x32xbf16>
    %cst_20 = arith.constant dense<0.000000e+00> : vector<16x32xf32>
    %44 = tpu.matmul %42, %43, %cst_20 {dimension_numbers = #tpu.dot_dimension_numbers<[1], [0], [0], [1], [0, 0, 1, 1], [], []>} : vector<16x32xbf16>, vector<32x32xbf16>, vector<16x32xf32> -> vector<16x32xf32>
    %45 = vector.shape_cast %44 : vector<16x32xf32> to vector<2x8x32xf32>
    %c0_21 = arith.constant 0 : index
    %c0_22 = arith.constant 0 : index
    %46 = vector.load %arg3[%c0_21, %c0_22] : memref<2x8xf32, #tpu.memory_space<vmem>>, vector<2x8xf32>
    %47 = vector.shape_cast %46 : vector<2x8xf32> to vector<2x8x1xf32>
    %c0_23 = arith.constant 0 : index
    %c0_24 = arith.constant 0 : index
    %48 = vector.load %arg9[%c0_23, %c0_24] : memref<1x32xf32, #tpu.memory_space<vmem>>, vector<1x32xf32>
    %49 = vector.shape_cast %48 : vector<1x32xf32> to vector<1x1x32xf32>
    %50 = vector.broadcast %47 : vector<2x8x1xf32> to vector<2x8x32xf32>
    %51 = vector.broadcast %49 : vector<1x1x32xf32> to vector<2x8x32xf32>
    %52 = arith.mulf %50, %51 : vector<2x8x32xf32>
    %53 = vector.shape_cast %39 : vector<2x32xf32> to vector<2x1x32xf32>
    %54 = vector.broadcast %53 : vector<2x1x32xf32> to vector<2x8x32xf32>
    %55 = arith.addf %45, %54 : vector<2x8x32xf32>
    %56 = arith.addf %55, %52 : vector<2x8x32xf32>
    %57 = math.tanh %56 : vector<2x8x32xf32>
    %c0_25 = arith.constant 0 : index
    %c0_26 = arith.constant 0 : index
    %58 = vector.load %arg10[%c0_25, %c0_26] : memref<1x32xf32, #tpu.memory_space<vmem>>, vector<1x32xf32>
    %59 = vector.shape_cast %58 : vector<1x32xf32> to vector<1x1x32xf32>
    %60 = vector.broadcast %59 : vector<1x1x32xf32> to vector<2x8x32xf32>
    %61 = arith.mulf %57, %60 : vector<2x8x32xf32>
    %cst_27 = arith.constant dense<0.000000e+00> : vector<2x8xf32>
    %62 = vector.multi_reduction <add>, %61, %cst_27 [2] : vector<2x8x32xf32> to vector<2x8xf32>
    %cst_28 = arith.constant dense<0xFF800000> : vector<2xf32>
    %63 = vector.multi_reduction <maximumf>, %62, %cst_28 [1] : vector<2x8xf32> to vector<2xf32>
    %64 = vector.shape_cast %63 : vector<2xf32> to vector<2x1xf32>
    %65 = vector.broadcast %64 : vector<2x1xf32> to vector<2x8xf32>
    %66 = arith.subf %62, %65 : vector<2x8xf32>
    %67 = math.exp %66 : vector<2x8xf32>
    %cst_29 = arith.constant dense<0.000000e+00> : vector<2xf32>
    %68 = vector.multi_reduction <add>, %67, %cst_29 [1] : vector<2x8xf32> to vector<2xf32>
    %69 = vector.shape_cast %68 : vector<2xf32> to vector<2x1xf32>
    %70 = tpu.reciprocal %69 {approx = true} : vector<2x1xf32> -> vector<2x1xf32>
    %71 = vector.broadcast %70 : vector<2x1xf32> to vector<2x8xf32>
    %72 = arith.mulf %67, %71 : vector<2x8xf32>
    %73 = arith.truncf %72 : vector<2x8xf32> to vector<2x8xbf16>
    %74 = vector.shape_cast %73 : vector<2x8xbf16> to vector<2x1x8xbf16>
    "tpu.trace_start"() <{level = 10 : i32, message = "bql,blh->bqh"}> : () -> ()
    %cst_30 = arith.constant dense<0.000000e+00> : vector<2x1x32xf32>
    %75 = tpu.matmul %74, %41, %cst_30 {dimension_numbers = #tpu.dot_dimension_numbers<[2], [1], [1], [2], [0, 0, 0, 1, 1, 2], [0], [0]>} : vector<2x1x8xbf16>, vector<2x8x32xbf16>, vector<2x1x32xf32> -> vector<2x1x32xf32>
    "tpu.trace_stop"() : () -> ()
    %cst_31 = arith.constant dense<0.000000e+00> : vector<2x32xf32>
    %76 = vector.multi_reduction <add>, %75, %cst_31 [1] : vector<2x1x32xf32> to vector<2x32xf32>
    %77 = arith.truncf %76 : vector<2x32xf32> to vector<2x32xbf16>
    %c0_32 = arith.constant 0 : index
    %c0_33 = arith.constant 0 : index
    %78 = vector.load %arg11[%c0_32, %c0_33] : memref<32x16xbf16, #tpu.memory_space<vmem>>, vector<32x16xbf16>
    %cst_34 = arith.constant dense<0.000000e+00> : vector<2x16xf32>
    %79 = tpu.matmul %77, %78, %cst_34 {dimension_numbers = #tpu.dot_dimension_numbers<[1], [0], [0], [1], [0, 0, 1, 1], [], []>} : vector<2x32xbf16>, vector<32x16xbf16>, vector<2x16xf32> -> vector<2x16xf32>
    %80 = arith.addf %40, %79 : vector<2x16xf32>
    %c0_35 = arith.constant 0 : index
    %c0_36 = arith.constant 0 : index
    %81 = vector.load %arg12[%c0_35, %c0_36] : memref<1x16xf32, #tpu.memory_space<vmem>>, vector<1x16xf32>
    %82 = vector.broadcast %81 : vector<1x16xf32> to vector<2x16xf32>
    %83 = arith.addf %80, %82 : vector<2x16xf32>
    %84 = arith.truncf %83 : vector<2x16xf32> to vector<2x16xbf16>
    %c0_37 = arith.constant 0 : index
    %c0_38 = arith.constant 0 : index
    %85 = vector.load %arg13[%c0_37, %c0_38] : memref<16x32xbf16, #tpu.memory_space<vmem>>, vector<16x32xbf16>
    %cst_39 = arith.constant dense<0.000000e+00> : vector<2x32xf32>
    %86 = tpu.matmul %84, %85, %cst_39 {dimension_numbers = #tpu.dot_dimension_numbers<[1], [0], [0], [1], [0, 0, 1, 1], [], []>} : vector<2x16xbf16>, vector<16x32xbf16>, vector<2x32xf32> -> vector<2x32xf32>
    %c0_40 = arith.constant 0 : index
    %c0_41 = arith.constant 0 : index
    %87 = vector.load %arg14[%c0_40, %c0_41] : memref<1x32xf32, #tpu.memory_space<vmem>>, vector<1x32xf32>
    %88 = vector.broadcast %87 : vector<1x32xf32> to vector<2x32xf32>
    %89 = arith.addf %86, %88 : vector<2x32xf32>
    %cst_42 = arith.constant dense<0xFF800000> : vector<2xf32>
    %90 = vector.multi_reduction <maximumf>, %89, %cst_42 [1] : vector<2x32xf32> to vector<2xf32>
    %91 = vector.shape_cast %90 : vector<2xf32> to vector<2x1xf32>
    %92 = vector.broadcast %91 : vector<2x1xf32> to vector<2x32xf32>
    %93 = arith.subf %89, %92 : vector<2x32xf32>
    %94 = math.exp %93 : vector<2x32xf32>
    %cst_43 = arith.constant dense<0.000000e+00> : vector<2xf32>
    %95 = vector.multi_reduction <add>, %94, %cst_43 [1] : vector<2x32xf32> to vector<2xf32>
    %96 = vector.shape_cast %95 : vector<2xf32> to vector<2x1xf32>
    %97 = tpu.reciprocal %96 {approx = true} : vector<2x1xf32> -> vector<2x1xf32>
    %98 = vector.broadcast %97 : vector<2x1xf32> to vector<2x32xf32>
    %99 = arith.mulf %94, %98 : vector<2x32xf32>
    %cst_44 = arith.constant 0.000000e+00 : f32
    %100 = vector.broadcast %cst_44 : f32 to vector<2x120xf32>
    %101 = tpu.concatenate %99, %72, %76, %32, %30, %100 in 1 : vector<2x32xf32>, vector<2x8xf32>, vector<2x32xf32>, vector<2x32xf32>, vector<2x32xf32>, vector<2x120xf32> -> vector<2x256xf32>
    %c0_45 = arith.constant 0 : index
    %c0_46 = arith.constant 0 : index
    %102 = vector.load %arg15[%c0_45, %c0_46] : memref<2x256xf32, #tpu.memory_space<vmem>>, vector<2x256xf32>
    tpu.vector_store %arg15[%c0_45, %c0_46], %101 {strides = array<i32>} : memref<2x256xf32, #tpu.memory_space<vmem>>, vector<2x256xf32>,
    return
  }
}

</mosaic_0001>

<bundles_post_ra>
// kernel: tpu_custom_call.1
= control target key start
LH: loop header
LB: loop body
LE: loop exit
PB: predicated region body
PF: predicated region fallthrough
CT: control target
= control target key end

     0   :  { %20 = vsyncpa [#allocation3], 0  ;;  %s1553_s0 = inlined_call_operand.hbm [shape: f32[2,64], index: 0, kind: input, shape index: {}]   ;;  %s1554_s1 = inlined_call_operand.hbm [shape: f32[2,32], index: 1, kind: input, shape index: {}]   ;;  %s1555_s2 = inlined_call_operand.hbm [shape: bf16[2,8,32], index: 2, kind: input, shape index: {}]   ;;  %s1556_s3 = inlined_call_operand.hbm [shape: f32[2,8], index: 3, kind: input, shape index: {}]   ;;  %s1557_s4 = inlined_call_operand.hbm [shape: bf16[64,128], index: 4, kind: input, shape index: {}]   ;;  %s1558_s5 = inlined_call_operand.hbm [shape: f32[1,128], index: 5, kind: input, shape index: {}]   ;;  %s1559_s6 = inlined_call_operand.vmem [shape: bf16[32,32], index: 6, kind: input, shape index: {}]   ;;  %s1560_s7 = inlined_call_operand.vmem [shape: bf16[32,48], index: 7, kind: input, shape index: {}]   ;;  %s1561_s8 = inlined_call_operand.hbm [shape: f32[1,32], index: 8, kind: input, shape index: {}]   ;;  %s1562_s9 = inlined_call_operand.hbm [shape: f32[1,32], index: 9, kind: input, shape index: {}]   ;;  %s1563_s10 = inlined_call_operand.vmem [shape: f32[1,32], index: 10, kind: input, shape index: {}]   ;;  %s1564_s11 = inlined_call_operand.vmem [shape: bf16[32,16], index: 11, kind: input, shape index: {}]   ;;  %s1565_s12 = inlined_call_operand.vmem [shape: f32[1,16], index: 12, kind: input, shape index: {}]   ;;  %s1566_s13 = inlined_call_operand.hbm [shape: bf16[16,32], index: 13, kind: input, shape index: {}]   ;;  %s1567_s14 = inlined_call_operand.vmem [shape: f32[1,32], index: 14, kind: input, shape index: {}]   ;;  %s1568_s15 = inlined_call_operand.hbm [shape: f32[2,256], index: 15, kind: output, shape index: {}]  }
   0x1   :  { %21 = vsyncpa [#allocation6], 0 }
   0x2   :  { %22 = vsyncpa [#allocation9], 0 }
   0x3   :  { %23 = vsyncpa [#allocation12], 0 }
   0x4   :  { %24 = vsyncpa [#allocation15], 0 }
   0x5   :  { %25 = vsyncpa [#allocation4], 0  ;;  %s1283_s18 = smov [#allocation5]   ;;  %s1284_s20 = smov [#allocation8]  }
   0x6   :  { %s42_s19 = sshll.u32 %s1283_s18, 4  ;;  %s64_s21 = sshll.u32 %s1284_s20, 4  ;;  %s43_s19 = int_to_ptr.vmem [resolvable:$true] %s42_s19  ;;  %s65_s21 = int_to_ptr.vmem [resolvable:$true] %s64_s21 }
   0x7   :  { %s1079_s22 = scalar_lea.vmem %s43_s19, 32  ;;  %p1084_p1 = scmp.lt.s32.totalorder %s43_s19, %s43_s19 }
   0x8   :  { %p1080_p0 = scmp.ne.s32.totalorder %s43_s19, %s1079_s22  ;;  %p1085_p2 = scmp.lt.s32.totalorder %s1079_s22, %s1079_s22 }
   0xa   :  { %p1086_p3 = por %p1085_p2, %p1084_p1 }
   0xc   :  { %p1087_p4 = pnand %p1086_p3, %p1080_p0 }
   0xe   :  { %1090 = shalt.err (!%p1087_p4)
}
   0xf   :  { %45 = dma.hbm_to_vmem [thread:$0]  %s1554_s1, 32, %s43_s19, [#allocation6]  }
  0x10   :  { %s1099_s25 = scalar_lea.vmem %s65_s21, 32  ;;  %p1104_p6 = scmp.lt.s32.totalorder %s65_s21, %s65_s21 }
  0x11   :  { %p1100_p5 = scmp.ne.s32.totalorder %s65_s21, %s1099_s25  ;;  %p1105_p7 = scmp.lt.s32.totalorder %s1099_s25, %s1099_s25 }
  0x13   :  { %p1106_p8 = por %p1105_p7, %p1104_p6 }
  0x15   :  { %p1107_p9 = pnand %p1106_p8, %p1100_p5 }
  0x17   :  { %1110 = shalt.err (!%p1107_p9)
}
  0x18   :  { %67 = dma.hbm_to_vmem [thread:$0]  %s1556_s3, 32, %s65_s21, [#allocation9]  }
  0x19   :  { %s1285_s28 = smov [#allocation11]   ;;  %s1286_s30 = smov [#allocation14]  }
  0x1a   :  { %s86_s29 = sshll.u32 %s1285_s28, 4  ;;  %s110_s16 = sshll.u32 %s1286_s30, 4  ;;  %s87_s29 = int_to_ptr.vmem [resolvable:$true] %s86_s29  ;;  %s111_s16 = int_to_ptr.vmem [resolvable:$true] %s110_s16 }
  0x1b   :  { %s1119_s17 = scalar_lea.vmem %s87_s29, 16  ;;  %s1123_s1 = scalar_lea.vmem %s87_s29, 32 }
  0x1c   :  { %p1120_p10 = scmp.ne.s32.totalorder %s87_s29, %s1119_s17  ;;  %p1124_p11 = scmp.lt.s32.totalorder %s87_s29, %s87_s29 }
  0x1d   :  { %p1125_p12 = scmp.lt.s32.totalorder %s1123_s1, %s1119_s17 }
  0x1f   :  { %p1126_p13 = por %p1125_p12, %p1124_p11 }
  0x21   :  { %p1127_p0 = pnand %p1126_p13, %p1120_p10 }
  0x23   :  { %1130 = shalt.err (!%p1127_p0)
}
  0x24   :  { %89 = dma.hbm_to_vmem [thread:$0]  %s1558_s5, 16, %s87_s29, [#allocation12]  }
  0x25   :  { %s1139_s20 = scalar_lea.vmem %s111_s16, 16  ;;  %s1143_s3 = scalar_lea.vmem %s111_s16, 32 }
  0x26   :  { %p1140_p1 = scmp.ne.s32.totalorder %s111_s16, %s1139_s20  ;;  %p1144_p2 = scmp.lt.s32.totalorder %s111_s16, %s111_s16 }
  0x27   :  { %p1145_p3 = scmp.lt.s32.totalorder %s1143_s3, %s1139_s20 }
  0x29   :  { %p1146_p4 = por %p1145_p3, %p1144_p2 }
  0x2b   :  { %p1147_p5 = pnand %p1146_p4, %p1140_p1 }
  0x2d   :  { %1150 = shalt.err (!%p1147_p5)
}
  0x2e   :  { %113 = dma.hbm_to_vmem [thread:$0]  %s1562_s9, 16, %s111_s16, [#allocation15]  }
  0x2f   :  { %s1287_s23 = smov [#allocation2]   ;;  %s1288_s25 = smov [#allocation7]  }
  0x30   :  { %s32_s24 = sshll.u32 %s1287_s23, 4  ;;  %s51_s26 = sshll.u32 %s1288_s25, 4  ;;  %s33_s24 = int_to_ptr.vmem [resolvable:$true] %s32_s24  ;;  %s52_s26 = int_to_ptr.vmem [resolvable:$true] %s51_s26 }
  0x31   :  { %s1159_s27 = scalar_lea.vmem %s33_s24, 32  ;;  %p1164_p7 = scmp.lt.s32.totalorder %s33_s24, %s33_s24 }
  0x32   :  { %p1160_p6 = scmp.ne.s32.totalorder %s33_s24, %s1159_s27  ;;  %p1165_p8 = scmp.lt.s32.totalorder %s1159_s27, %s1159_s27 }
  0x34   :  { %p1166_p9 = por %p1165_p8, %p1164_p7 }
  0x36   :  { %p1167_p10 = pnand %p1166_p9, %p1160_p6 }
  0x38   :  { %1170 = shalt.err (!%p1167_p10)
}
  0x39   :  { %35 = dma.hbm_to_vmem [thread:$0]  %s1553_s0, 32, %s33_s24, [#allocation3]  }
  0x3a   :  { %s1179_s29 = scalar_lea.vmem %s52_s26, 128  ;;  %p1184_p12 = scmp.lt.s32.totalorder %s52_s26, %s52_s26 }
  0x3b   :  { %p1180_p11 = scmp.ne.s32.totalorder %s52_s26, %s1179_s29  ;;  %p1185_p13 = scmp.lt.s32.totalorder %s1179_s29, %s1179_s29 }
  0x3d   :  { %p1186_p0 = por %p1185_p13, %p1184_p12 }
  0x3f   :  { %p1187_p1 = pnand %p1186_p0, %p1180_p11 }
  0x41   :  { %1190 = shalt.err (!%p1187_p1)
}
  0x42   :  { %s1289_s9 = smov 64   ;;  %s1290_s30 = smov 4  }
  0x43   :  { %57 = dma.hbm_to_vmem [thread:$0]  %s1555_s2, 128, %s52_s26, [#allocation6], %s1289_s9, %s1289_s9, %s1290_s30  }
  0x44   :  { %s1291_s1 = smov [#allocation10]   ;;  %s1292_s19 = smov [#allocation13]  }
  0x45   :  { %s73_s18 = sshll.u32 %s1291_s1, 4  ;;  %s100_s0 = sshll.u32 %s1292_s19, 4  ;;  %s74_s18 = int_to_ptr.vmem [resolvable:$true] %s73_s18  ;;  %s101_s0 = int_to_ptr.vmem [resolvable:$true] %s100_s0 }
  0x46   :  { %s1199_s20 = scalar_lea.vmem %s74_s18, 512  ;;  %p1204_p3 = scmp.lt.s32.totalorder %s74_s18, %s74_s18 }
  0x47   :  { %p1200_p2 = scmp.ne.s32.totalorder %s74_s18, %s1199_s20  ;;  %p1205_p4 = scmp.lt.s32.totalorder %s1199_s20, %s1199_s20 }
  0x49   :  { %p1206_p5 = por %p1205_p4, %p1204_p3 }
  0x4b   :  { %p1207_p6 = pnand %p1206_p5, %p1200_p2 }
  0x4d   :  { %1210 = shalt.err (!%p1207_p6)
}
  0x4e   :  { %79 = dma.hbm_to_vmem [thread:$0]  %s1557_s4, 512, %s74_s18, [#allocation9], %s1289_s9, %s1289_s9, %s1290_s30  }
  0x4f   :  { %s1219_s2 = scalar_lea.vmem %s101_s0, 16  ;;  %s1223_s22 = scalar_lea.vmem %s101_s0, 32 }
  0x50   :  { %p1220_p7 = scmp.ne.s32.totalorder %s101_s0, %s1219_s2  ;;  %p1224_p8 = scmp.lt.s32.totalorder %s101_s0, %s101_s0 }
  0x51   :  { %p1225_p9 = scmp.lt.s32.totalorder %s1223_s22, %s1219_s2 }
  0x53   :  { %p1226_p10 = por %p1225_p9, %p1224_p8 }
  0x55   :  { %p1227_p11 = pnand %p1226_p10, %p1220_p7 }
  0x57   :  { %1230 = shalt.err (!%p1227_p11)
}
  0x58   :  { %103 = dma.hbm_to_vmem [thread:$0]  %s1561_s8, 16, %s101_s0, [#allocation12]  }
  0x59   :  { %s1293_s25 = smov [#allocation16]  }
  0x5a   :  { %s125_s26 = sshll.u32 %s1293_s25, 4  ;;  %s126_s26 = int_to_ptr.vmem [resolvable:$true] %s125_s26 }
  0x5b   :  { %s1239_s27 = scalar_lea.vmem %s126_s26, 128  ;;  %p1244_p13 = scmp.lt.s32.totalorder %s126_s26, %s126_s26 }
  0x5c   :  { %p1240_p12 = scmp.ne.s32.totalorder %s126_s26, %s1239_s27  ;;  %p1245_p0 = scmp.lt.s32.totalorder %s1239_s27, %s1239_s27 }
  0x5e   :  { %p1246_p1 = por %p1245_p0, %p1244_p13 }
  0x60   :  { %p1247_p2 = pnand %p1246_p1, %p1240_p12 }
  0x62   :  { %1250 = shalt.err (!%p1247_p2)
}
  0x63   :  { %131 = dma.hbm_to_vmem [thread:$0]  %s1566_s13, 128, %s126_s26, [#allocation15], %s1289_s9, %s1289_s9, %s1290_s30  }
  0x64   :  { %1271 = dma.done.wait [#allocation3], 32  }
  0x65   :  { %1272 = vsyncadd [#allocation3], 4294967264 }
  0x66   :  { %1273 = dma.done.wait [#allocation6], 160  }
  0x67   :  { %1274 = vsyncadd [#allocation6], 4294967136 }
  0x68   :  { %1275 = dma.done.wait [#allocation9], 544  }
  0x69   :  { %1276 = vsyncadd [#allocation9], 4294966752 }
  0x6a   :  { %1277 = dma.done.wait [#allocation12], 32  }
  0x6b   :  { %1278 = vsyncadd [#allocation12], 4294967264 }
  0x6c   :  { %1279 = dma.done.wait [#allocation15], 144  }
  0x6d   :  { %1280 = vsyncadd [#allocation15], 4294967152  ;;  %v1294_v0 = vmov 0.0   ;;  %vm1295_vm0 = vmmov 0   ;;  %v1037_v1 = vld [vmem:[#allocation10 + $0x18] sm:$0xff]   ;;  %v1038_v2 = vld [vmem:[#allocation10 + $0x10] sm:$0xff]   ;;  %v416_v29 = vlaneseq }
  0x6e   :  { %960 = vmatprep.subr.bf16.mxu0 %v1294_v0  ;;  %968 = vmatprep.mubr.msk.bf16.mxu0 %vm1295_vm0, %v1294_v0  ;;  %v1039_v3 = vld [vmem:[#allocation10 + $0x8] sm:$0xff]   ;;  %v1040_v4 = vld [vmem:[#allocation10] sm:$0xff]   ;;  %v162_v5 = vld [vmem:[#allocation2] sm:$0x3]  ;;  %vm203_vm1 = vcmask 523264   ;;  %s1296_s8 = smov 32  }
  0x6f   :  { %972 = vmatprep.subr.bf16.mxu1 %v1294_v0  ;;  %976 = vmatprep.mubr.msk.bf16.mxu1 %vm1295_vm0, %v1294_v0  ;;  %v163_v6 = vpack.c.bf16 %v162_v5, %v162_v5  ;;  %v913_v7 = vld [vmem:[#allocation11] ss:$0 sm:$0xff]  ;;  %v254_v14 = vld [vmem:[#allocation5] sm:$0x3]  ;;  %v1450_v31 = vshrl.u32 %v416_v29, 7  ;;  %vm296_vm2 = vcmask 261120  }
  0x70   :  { %961 = vmatpush3.bf16.msra.mxu0 %v1037_v1  ;;  %v1041_v25 = vld [vmem:[%s1560_s7 + $0x8] sm:$0xff]   ;;  %v1042_v26 = vld [vmem:[%s1560_s7] sm:$0xff]   ;;  %v1297_v44 = vmov 1966171168   ;;  %v923_v47 = vld [vmem:[#allocation13] ss:$0 sm:$0xff] }
  0x71   :  { %962 = vmatprep.subr.bf16.mxu0 %v1294_v0  ;;  %973 = vmatpush3.bf16.msra.mxu1 %v1041_v25  ;;  %v415_v33 = vld [vmem:[#allocation8] sm:$0x3]  ;;  %v1455_v34 = vsub.s32 0, %v1450_v31  ;;  %v1458_v35 = vsub.s32 1, %v1450_v31  ;;  %v1044_v40 = vld [vmem:[%s1559_s6] sm:$0xff]   ;;  %v441_v45 = vunpack.c.l.s4 %v1297_v44  ;;  %vm505_vm3 = vcmask 1041409  }
  0x72   :  { %974 = vmatprep.subr.bf16.mxu1 %v1294_v0  ;;  %v1043_v38 = vld [vmem:[%s1559_s6 + $0x8] sm:$0xff]   ;;  %v1472_v41 = vld [vmem:[#allocation7] sm:$0xf]  ;;  %v928_v54 = vld [vmem:[#allocation14] ss:$0 sm:$0xff]  ;;  %vm508_vm4 = vcmask 58368  }
  0x73   :  { %v419_v36 = vrot.slane %v415_v33, %v1455_v34  ;;  %v426_v37 = vrot.slane %v415_v33, %v1458_v35  ;;  %v1474_v42 = vld [vmem:[#allocation7 + $0x4] sm:$0xf]  ;;  %v442_v46 = vunpack.c.0.s8 %v441_v45  ;;  %vm580_vm5 = vcmask 1043456   ;;  %s1299_s3 = smov 96   ;;  %s1300_s2 = smov 40  }
  0x74   :  { %963 = vmatpush3.bf16.msra.mxu0 %v1038_v2  ;;  %v924_v43 = vcombine.low %v1472_v41, %v1474_v42  ;;  %vm576_vm6 = vcmask 64512   ;;  %vm784_vm7 = vcmask 130048   ;;  %vm828_vm8 = vcmask 254976   ;;  %s1301_s22 = smov 104   ;;  %s1303_s23 = smov [#allocation17]  }
  0x75   :  { %964 = vmatprep.subr.bf16.mxu0 %v1294_v0  ;;  %975 = vmatpush3.bf16.msra.mxu1 %v1042_v26  ;;  %v445_v48 = vsub.s32 %v442_v46, %v1450_v31  ;;  %v1298_v26 = vmov 0   ;;  %vm875_vm9 = vcmask 326656   ;;  %vm877_vm10 = vcmask 588800   ;;  %s900_s24 = sshll.u32 %s1303_s23, 4  ;;  %s901_s24 = int_to_ptr.vmem [resolvable:$true] %s900_s24 }
  0x76   :  { %980 = vmatprep.subr.bf16.mxu1 %v1294_v0  ;;  %1036 = vset.pattern.permute.xlu0 %v1298_v26  ;;  %vm879_vm11 = vcmask 850944   ;;  %s1251_s25 = scalar_lea.vmem %s901_s24, 64  ;;  %p1256_p4 = scmp.lt.s32.totalorder %s901_s24, %s901_s24 }
  0x77   :  { %1035 = vset.pattern.permute.xlu1 %v1298_v26  ;;  %p1252_p3 = scmp.ne.s32.totalorder %s901_s24, %s1251_s25  ;;  %p1257_p5 = scmp.lt.s32.totalorder %s1251_s25, %s1251_s25 }
  0x78   :  { %965 = vmatpush3.bf16.msra.mxu0 %v1039_v3 }
  0x79   :  { %966 = vmatprep.subr.bf16.mxu0 %v1294_v0  ;;  %p1258_p6 = por %p1257_p5, %p1256_p4 }
  0x7b   :  { %p1259_p7 = pnand %p1258_p6, %p1252_p3 }
  0x7c   :  { %967 = vmatpush3.bf16.msra.mxu0 %v1040_v4 }
  0x7d   :  { %988 = vmatprep.subr.bf16.mxu0 %v1294_v0 }
  0x7f   :  { %969 = vmatmul.mubr.msk.bf16.vlgmr.msra.gmra.mxu0 %vm203_vm1, %v163_v6 }
  0x80   :  { %990 = vmatprep.mubr.msk.bf16.mxu0 %vm1295_vm0, %v1294_v0 }
 0x13f   :  { %v241_v8 = vpop.f32.mrf.mxu0 }
 0x140   :  { %v242_v9 = vadd.f32 %v913_v7, %v241_v8 }
 0x141   :  { %v970_v10 = vpop.f32.mrf.mxu0 }
 0x142   :  { %1049 = vtanh.f32 %v242_v9  ;;  %v919_v15 = vmul.f32 -1.442695, %v242_v9  ;;  %v929_v10 = vld [vmem:[%s1563_s10] ss:$0 sm:$0xff] }
 0x143   :  { %v244_v11 = vpop.f32.mrf.mxu0 }
 0x144   :  { %1051 = vpow2.f32 %v919_v15 }
 0x145   :  { %v971_v12 = vpop.f32.mrf.mxu0 }
 0x14f   :  { %v1050_v13 = vpop.eup %1049 }
 0x150   :  { %261 = vrot.lane.b32.xlu0 %v1050_v13, %s1289_s9 }
 0x151   :  { %v1052_v16 = vpop.eup %1051 }
 0x152   :  { %v250_v17 = vadd.f32 1.0, %v1052_v16 }
 0x154   :  { %256 = vrot.lane.b32.xlu0 %v254_v14, %s1296_s8  ;;  %1053 = vrcp.f32 %v250_v17  ;;  %v1495_v17 = vand.u32 127, %v416_v29 }
 0x161   :  { %v1054_v18 = vpop.eup %1053 }
 0x1c2   :  { %v262_v19 = vpop.permute.xlu0 %261 }
 0x1c3   :  { %v264_v20 = vmul.f32 %v1054_v18, %v262_v19 }
 0x1c5   :  { %266 = vrot.lane.b32.xlu1 %v264_v20, %s1296_s8 }
 0x1c6   :  { %v257_v21 = vpop.permute.xlu0 %256 }
 0x1c7   :  { %v259_v22 = vmul.f32 %v1054_v18, %v257_v21 }
 0x237   :  { %v267_v23 = vpop.permute.xlu1 %266 }
 0x238   :  { %v1435_v24 = vadd.f32 %v267_v23, %v259_v22 }
 0x23a   :  { %1055 = vtanh.f32 %v1435_v24 }
 0x247   :  { %v1056_v27 = vpop.eup %1055 }
 0x248   :  { %272 = vrot.lane.b32.xlu1 %v1056_v27, %s1289_s9 }
 0x24c   :  { %421 = vbcast.lane.b32.xlu1 %v419_v36, 256 }
 0x2ba   :  { %v273_v28 = vpop.permute.xlu1 %272 }
 0x2bb   :  { %v1447_v30 = vmul.f32 %v1054_v18, %v273_v28  ;;  %v499_v18 = vsub.s32 %v1495_v17, %v1450_v31 }
 0x2bd   :  { %v276_v32 = vpack.c.bf16 %v1447_v30, %v1447_v30 }
 0x2be   :  { %v422_v55 = vpop.permute.xlu1 %421 }
 0x2bf   :  { %282 = vrot.lane.b32.xlu0 %v276_v32, %s1296_s8  ;;  %v437_v60 = vmul.f32 %v928_v54, %v422_v55 }
 0x2c3   :  { %428 = vbcast.lane.b32.xlu0 %v426_v37, 256 }
 0x331   :  { %v283_v39 = vpop.permute.xlu0 %282 }
 0x332   :  { %977 = vmatmul.mubr.msk.bf16.vlgmr.msra.gmra.mxu1 %vm296_vm2, %v283_v39 }
 0x333   :  { %981 = vmatpush3.bf16.msra.mxu1 %v1043_v38  ;;  %984 = vmatprep.mubr.msk.bf16.mxu1 %vm1295_vm0, %v1294_v0 }
 0x334   :  { %982 = vmatprep.subr.bf16.mxu1 %v1294_v0 }
 0x335   :  { %v429_v63 = vpop.permute.xlu0 %428 }
 0x336   :  { %v438_v5 = vmul.f32 %v928_v54, %v429_v63 }
 0x337   :  { %983 = vmatpush3.bf16.msra.mxu1 %v1044_v40 }
 0x338   :  { %994 = vmatprep.subr.bf16.mxu1 %v1294_v0 }
 0x33a   :  { %985 = vmatmul.mubr.msk.bf16.vlgmr.msra.gmra.mxu1 %vm296_vm2, %v924_v43 }
 0x33b   :  { %996 = vmatprep.mubr.msk.bf16.mxu1 %vm1295_vm0, %v1294_v0 }
 0x3f2   :  { %v1484_v49 = vpop.f32.mrf.mxu1 }
 0x3f3   :  { %v347_v50 = vadd.f32 %v923_v47, %v1484_v49 }
 0x3f4   :  { %v978_v51 = vpop.f32.mrf.mxu1 }
 0x3f5   :  { %v446_v52 = vrot.slane %v347_v50, %v445_v48 }
 0x3f6   :  { %v337_v53 = vpop.f32.mrf.mxu1 }
 0x3f7   :  { %v447_v56 = vcombine.high %v446_v52, %v446_v52  ;;  %v454_v57 = vrot.slane %v446_v52, %v445_v48 }
 0x3f8   :  { %v979_v58 = vpop.f32.mrf.mxu1 }
 0x3f9   :  { %v465_v59 = vrot.slane %v454_v57, %v1455_v34  ;;  %v461_v61 = vrot.slane %v447_v56, %v445_v48  ;;  %v638_v48 = vsel %vm580_vm5, %v1474_v42, 0  ;;  %v582_v42 = vsel %vm580_vm5, %v1472_v41, 0  ;;  %v1046_v41 = vld [vmem:[%s1564_s11 + $0x8] sm:$0xff]  }
 0x3fa   :  { %v408_v62 = vpop.f32.mrf.mxu1  ;;  %995 = vmatpush3.bf16.msra.mxu1 %v638_v48  ;;  %989 = vmatpush3.bf16.msra.mxu0 %v582_v42 }
 0x3fb   :  { %v472_v1 = vadd.f32 %v465_v59, %v408_v62  ;;  %v469_v4 = vrot.slane %v461_v61, %v1455_v34  ;;  %1008 = vmatprep.subr.bf16.mxu1 %v1294_v0  ;;  %1000 = vmatprep.subr.bf16.mxu0 %v1294_v0 }
 0x3fc   :  { %v986_v2 = vpop.f32.mrf.mxu1 }
 0x3fd   :  { %v474_v3 = vadd.f32 %v472_v1, %v437_v60  ;;  %v1047_v1 = vld [vmem:[%s1564_s11] sm:$0xff]  }
 0x3fe   :  { %v411_v6 = vpop.f32.mrf.mxu1 }
 0x3ff   :  { %1057 = vtanh.f32 %v474_v3  ;;  %v473_v7 = vadd.f32 %v469_v4, %v411_v6 }
 0x400   :  { %v987_v8 = vpop.f32.mrf.mxu1 }
 0x401   :  { %v475_v9 = vadd.f32 %v473_v7, %v438_v5 }
 0x403   :  { %1059 = vtanh.f32 %v475_v9 }
 0x40c   :  { %v1058_v11 = vpop.eup %1057 }
 0x40d   :  { %v485_v12 = vmul.f32 %v1058_v11, %v929_v10 }
 0x40f   :  { %v487_v13 = vsel %vm296_vm2, %v485_v12, 0.0 }
 0x410   :  { %v1060_v14 = vpop.eup %1059  ;;  %488 = vadd.xlane.f32.xlu1 %v487_v13 }
 0x411   :  { %v486_v15 = vmul.f32 %v1060_v14, %v929_v10 }
 0x413   :  { %v490_v16 = vsel %vm296_vm2, %v486_v15, 0.0 }
 0x414   :  { %491 = vadd.xlane.f32.xlu0 %v490_v16 }
 0x499   :  { %v489_v19 = vpop.xlane.xlu1 %488 }
 0x49a   :  { %v500_v21 = vrot.slane %v489_v19, %v499_v18 }
 0x49d   :  { %v492_v20 = vpop.xlane.xlu0 %491 }
 0x49e   :  { %v504_v22 = vrot.slane %v492_v20, %v499_v18 }
 0x4a0   :  { %v506_v23 = vsel %vm505_vm3, %v504_v22, %v500_v21  ;;  %v1048_v21 = vld [vmem:[#allocation16] sm:$0xff]  }
 0x4a1   :  { %v509_v25 = vsel %vm508_vm4, %v506_v23, -inf }
 0x4a2   :  { %510 = vmax.xlane.f32.xlu0 %v509_v25 }
 0x52b   :  { %v511_v27 = vpop.xlane.xlu0 %510 }
 0x52c   :  { %v516_v28 = vrot.slane %v511_v27, %v1455_v34  ;;  %v520_v29 = vrot.slane %v511_v27, %v1458_v35 }
 0x52e   :  { %v523_v32 = vsub.f32 %v489_v19, %v516_v28  ;;  %v524_v33 = vsub.f32 %v492_v20, %v520_v29  ;;  %v935_v19 = vld [vmem:[%s1565_s12] ss:$0 sm:$0xff] }
 0x530   :  { %v525_v36 = vmul.f32 1.442695, %v523_v32  ;;  %v527_v37 = vmul.f32 1.442695, %v524_v33 }
 0x532   :  { %1061 = vpow2.f32 %v525_v36  ;;  %v936_v36 = vld [vmem:[%s1567_s14] ss:$0 sm:$0xff]  ;;  %s1302_s14 = smov 72  }
 0x533   :  { %1063 = vpow2.f32 %v527_v37 }
 0x53f   :  { %v1062_v38 = vpop.eup %1061 }
 0x540   :  { %v1064_v39 = vpop.eup %1063  ;;  %532 = vperm.xlu1 %1035, %v1062_v38  }
 0x541   :  { %535 = vperm.xlu0 %1036, %v1064_v39  }
 0x5bb   :  { %v533_v40 = vpop.permute.xlu1 %532 }
 0x5bc   :  { %v536_v43 = vpop.permute.xlu0 %535  ;;  %v540_v44 = vrot.slane %v533_v40, %v499_v18 }
 0x5bd   :  { %v544_v45 = vrot.slane %v536_v43, %v499_v18 }
 0x5bf   :  { %v545_v46 = vsel %vm505_vm3, %v544_v45, %v540_v44 }
 0x5c0   :  { %v547_v47 = vsel %vm508_vm4, %v545_v46, 0.0 }
 0x5c1   :  { %548 = vadd.xlane.f32.xlu1 %v547_v47 }
 0x64a   :  { %v549_v50 = vpop.xlane.xlu1 %548 }
 0x64b   :  { %1065 = vrcp.f32 %v549_v50 }
 0x658   :  { %v1066_v51 = vpop.eup %1065 }
 0x659   :  { %v559_v52 = vrot.slane %v1066_v51, %v1458_v35  ;;  %v555_v53 = vrot.slane %v1066_v51, %v1455_v34 }
 0x65b   :  { %v563_v54 = vmul.f32 %v1064_v39, %v559_v52  ;;  %v1509_v55 = vmul.f32 %v1062_v38, %v555_v53  ;;  %v848_v52 = vadd.s32 4294967264, %v1495_v17 }
 0x65d   :  { %v565_v56 = vpack.c.bf16 %v563_v54, %v563_v54  ;;  %v564_v58 = vpack.c.bf16 %v1509_v55, %v1509_v55 }
 0x65f   :  { %v625_v57 = vunpack.c.l.b16 %v565_v56  ;;  %v567_v59 = vunpack.c.l.b16 %v564_v58 }
 0x661   :  { %627 = vperm.xlu0 %1036, %v625_v57  }
 0x665   :  { %569 = vperm.xlu0 %1036, %v567_v59  }
 0x669   :  { %761 = vrot.lane.b32.xlu0 %v935_v19, %s1296_s8 }
 0x6dc   :  { %v628_v60 = vpop.permute.xlu0 %627 }
 0x6dd   :  { %v632_v35 = vrot.slane %v628_v60, %v499_v18 }
 0x6df   :  { %v633_v34 = vpack.c.b16 %v632_v35, %v632_v35 }
 0x6e0   :  { %v570_v61 = vpop.permute.xlu0 %569 }
 0x6e1   :  { %v574_v62 = vrot.slane %v570_v61, %v499_v18  ;;  %997 = vmatmul.mubr.msk.bf16.vlgmr.msra.gmra.mxu1 %vm576_vm6, %v633_v34 }
 0x6e2   :  { %1010 = vmatprep.mubr.msk.bf16.mxu1 %vm1295_vm0, %v1294_v0  ;;  %1009 = vmatpush3.bf16.msra.mxu1 %v1048_v21 }
 0x6e3   :  { %v575_v63 = vpack.c.b16 %v574_v62, %v574_v62 }
 0x6e4   :  { %v762_v27 = vpop.permute.xlu0 %761 }
 0x6e5   :  { %991 = vmatmul.mubr.msk.bf16.vlgmr.msra.gmra.mxu0 %vm576_vm6, %v575_v63 }
 0x6e6   :  { %1004 = vmatprep.mubr.msk.bf16.mxu0 %vm1295_vm0, %v1294_v0  ;;  %1001 = vmatpush3.bf16.msra.mxu0 %v1046_v41 }
 0x6e7   :  { %1002 = vmatprep.subr.bf16.mxu0 %v1294_v0 }
 0x6ea   :  { %1003 = vmatpush3.bf16.msra.mxu0 %v1047_v1 }
 0x7a1   :  { %v674_v2 = vpop.f32.mrf.mxu1 }
 0x7a2   :  { %v683_v3 = vpack.c.bf16 %v674_v2, %v674_v2  ;;  %v861_v6 = vrot.slane %v674_v2, 7 }
 0x7a3   :  { %v998_v4 = vpop.f32.mrf.mxu1 }
 0x7a4   :  { %v691_v5 = vunpack.c.l.b16 %v683_v3 }
 0x7a5   :  { %v618_v7 = vpop.f32.mrf.mxu0  ;;  %v677_v8 = vpop.f32.mrf.mxu1 }
 0x7a6   :  { %v682_v9 = vpack.c.bf16 %v618_v7, %v618_v7  ;;  %v862_v10 = vsel %vm505_vm3, %v861_v6, %v618_v7  ;;  %v692_v13 = vrot.slane %v691_v5, 7 }
 0x7a7   :  { %v992_v11 = vpop.f32.mrf.mxu0  ;;  %v999_v12 = vpop.f32.mrf.mxu1 }
 0x7a8   :  { %v690_v14 = vunpack.c.l.b16 %v682_v9 }
 0x7a9   :  { %v621_v0 = vpop.f32.mrf.mxu0 }
 0x7aa   :  { %v693_v15 = vsel %vm505_vm3, %v692_v13, %v690_v14 }
 0x7ab   :  { %v694_v16 = vpack.c.b16 %v693_v15, %v693_v15  ;;  %v993_v18 = vpop.f32.mrf.mxu0 }
 0x7ad   :  { %1005 = vmatmul.mubr.msk.bf16.vlgmr.msra.gmra.mxu0 %vm296_vm2, %v694_v16 }
 0x86d   :  { %v744_v20 = vpop.f32.mrf.mxu0 }
 0x86e   :  { %751 = vrot.lane.b32.xlu1 %v744_v20, %s1296_s8 }
 0x86f   :  { %v1006_v22 = vpop.f32.mrf.mxu0 }
 0x871   :  { %v747_v23 = vpop.f32.mrf.mxu0 }
 0x872   :  { %846 = vperm.xlu1 %1035, %v563_v54   ;;  %v851_v54 = vsub.s32 %v848_v52, %v1450_v31 }
 0x873   :  { %v1007_v25 = vpop.f32.mrf.mxu0 }
 0x8e0   :  { %v752_v26 = vpop.permute.xlu1 %751 }
 0x8e1   :  { %v754_v28 = vadd.f32 %v752_v26, %v1484_v49 }
 0x8e3   :  { %v764_v29 = vadd.f32 %v762_v27, %v754_v28 }
 0x8e5   :  { %v765_v32 = vpack.c.bf16 %v764_v29, %v764_v29 }
 0x8e7   :  { %776 = vrot.lane.b32.xlu0 %v765_v32, %s1299_s3 }
 0x8ed   :  { %v847_v50 = vpop.permute.xlu1 %846 }
 0x8ee   :  { %v856_v57 = vrot.slane %v847_v50, %v851_v54 }
 0x959   :  { %v777_v33 = vpop.permute.xlu0 %776 }
 0x95a   :  { %1011 = vmatmul.mubr.msk.bf16.vlgmr.msra.gmra.mxu1 %vm784_vm7, %v777_v33 }
 0xa1a   :  { %v822_v37 = vpop.f32.mrf.mxu1 }
 0xa1b   :  { %v823_v38 = vadd.f32 %v936_v36, %v822_v37 }
 0xa1c   :  { %v1012_v39 = vpop.f32.mrf.mxu1 }
 0xa1d   :  { %v829_v40 = vsel %vm828_vm8, %v823_v38, -inf }
 0xa1e   :  { %830 = vmax.xlane.f32.xlu0 %v829_v40  ;;  %v825_v43 = vpop.f32.mrf.mxu1 }
 0xa20   :  { %v1013_v49 = vpop.f32.mrf.mxu1 }
 0xa34   :  { %843 = vperm.xlu0 %1036, %v1509_v55  }
 0xa38   :  { %863 = vrot.lane.b32.xlu0 %v862_v10, %s1300_s2 }
 0xa3c   :  { %867 = vrot.lane.b32.xlu0 %v1447_v30, %s1301_s22 }
 0xaa7   :  { %v831_v44 = vpop.xlane.xlu0 %830 }
 0xaa8   :  { %v832_v45 = vsub.f32 %v823_v38, %v831_v44 }
 0xaaa   :  { %v833_v46 = vmul.f32 1.442695, %v832_v45 }
 0xaac   :  { %1067 = vpow2.f32 %v833_v46 }
 0xaaf   :  { %v844_v53 = vpop.permute.xlu0 %843 }
 0xab0   :  { %v852_v30 = vrot.slane %v844_v53, %v851_v54 }
 0xab2   :  { %v857_v42 = vsel %vm505_vm3, %v856_v57, %v852_v30 }
 0xab3   :  { %v864_v55 = vpop.permute.xlu0 %863 }
 0xab7   :  { %v868_v60 = vpop.permute.xlu0 %867 }
 0xab9   :  { %v1068_v47 = vpop.eup %1067 }
 0xaba   :  { %v835_v48 = vsel %vm828_vm8, %v1068_v47, 0.0 }
 0xabb   :  { %836 = vadd.xlane.f32.xlu1 %v835_v48 }
 0xacc   :  { %871 = vrot.lane.b32.xlu1 %v1435_v24, %s1302_s14 }
 0xb44   :  { %v837_v51 = vpop.xlane.xlu1 %836 }
 0xb45   :  { %1069 = vrcp.f32 %v837_v51 }
 0xb48   :  { %v872_v24 = vpop.permute.xlu1 %871 }
 0xb49   :  { %v881_v31 = vsel %vm576_vm6, %v872_v24, 0.0 }
 0xb52   :  { %v1070_v56 = vpop.eup %1069 }
 0xb53   :  { %v839_v58 = vmul.f32 %v1070_v56, %v1068_v47 }
 0xb55   :  { %v874_v59 = vsel %vm296_vm2, %v839_v58, %v857_v42 }
 0xb56   :  { %v876_v35 = vsel %vm875_vm9, %v874_v59, %v864_v55 }
 0xb57   :  { %v878_v17 = vsel %vm877_vm10, %v876_v35, %v868_v60 }
 0xb58   :  { %v880_v34 = vsel %vm879_vm11, %v878_v17, %v872_v24 }
 0xb59   :  { %v884_v61 = vcombine.low %v880_v34, %v881_v31 }
 0xb5b   :  { %939 = vst.sshfl [vmem:[#allocation17] sm:$0x33 pattern:$0x76325410] %v884_v61 }
 0xb5c   :  { %1262 = shalt.err (!%p1259_p7)
}
 0xb5d   :  { %903 = dma.vmem_to_hbm [thread:$0]  %s901_s24, 64, %s1568_s15, [#allocation4]  }
 0xb5e   :  { %1281 = dma.done.wait [#allocation4], 64  }
 0xb5f   :  { %1282 = vsyncadd [#allocation4], 4294967232 }
 0xb60   :  { %907 = vsyncpa [#allocation3], 1 }
 0xb61   :  { %908 = vsyncpa [#allocation6], 1 }
 0xb62   :  { %909 = vsyncpa [#allocation9], 1 }
 0xb63   :  { %910 = vsyncpa [#allocation12], 1 }
 0xb64   :  { %911 = vsyncpa [#allocation15], 1 }
 0xb65   :  { %912 = vsyncpa [#allocation4], 1 }

</bundles_post_ra>
